<compile_context>
chip_gen: v7x
topology: tpu7x:2x2x1
jax: 0.10.0
libtpu: 0.0.40
codegen_flags: <defaults>
</compile_context>

<pallas_src>
import functools
import math

import jax
import jax.numpy as jnp
from jax.experimental import pallas as pl
from jax.experimental.pallas import tpu as pltpu


# --------------------------------------------------------------------------- #
# Kernel
# --------------------------------------------------------------------------- #
def _flash_attention_kernel(q_ref, k_ref, v_ref, o_ref,
                            qs_sc, m_sc, l_sc, acc_sc, *, scale, exp_dtype):
    # Block shapes:
    #   q_ref : (1, H, tq, D)   k_ref / v_ref : (1, H, nk, D)
    #   o_ref : (1, H, tq, D)
    # Scratch (persists across the KV grid axis):
    #   qs_sc : (H, tq, D) input dtype (scaled Q, hoisted out of the KV loop)
    #   m_sc / l_sc : (H, tq, 1) f32,  acc_sc : (H, tq, D) f32
    kv = pl.program_id(2)

    @pl.when(kv == 0)
    def _():
        # Hoisted Q scaling: the Q block is resident across the KV axis, so the
        # 1/sqrt(D) multiply runs once per Q tile instead of once per KV step.
        # `scale` is a weak Python float, so bf16 inputs stay bf16 here and
        # feed the MXU natively.
        qs_sc[...] = q_ref[0] * scale
        m_sc[...] = jnp.full(m_sc.shape, -jnp.inf, dtype=m_sc.dtype)
        l_sc[...] = jnp.zeros(l_sc.shape, dtype=l_sc.dtype)
        acc_sc[...] = jnp.zeros(acc_sc.shape, dtype=acc_sc.dtype)

    q = qs_sc[...]                                    # (H, tq, D)
    k = k_ref[0]                                      # (H, nk, D)
    v = v_ref[0]                                      # (H, nk, D)

    # QK^T: contraction over the last dim of BOTH operands -> no materialized
    # transpose of K (no XLU round trip).  f32 accumulation on the MXU.
    s = jnp.einsum("hqd,hkd->hqk", q, k,
                   preferred_element_type=jnp.float32)        # (H, tq, nk) f32

    # TODO(synk): optional `mask` argument (masked_fill with -inf, plus a NaN
    # guard for fully-masked rows) is not wired in.

    # Online softmax update.  Running statistics stay f32 on every generation.
    m_prev = m_sc[...]
    m_new = jnp.maximum(m_prev, jnp.max(s, axis=-1, keepdims=True))
    alpha = jnp.exp(m_prev - m_new)                           # (H, tq, 1) f32
    # Exponentials: bf16 on v6e/v7x with bf16 data (bf16 EUP path; p feeds the
    # PV matmul directly with no extra cast); f32 on v5e / f32 inputs.
    p = jnp.exp((s - m_new).astype(exp_dtype))                # (H, tq, nk)
    l_sc[...] = alpha * l_sc[...] + jnp.sum(
        p, axis=-1, keepdims=True, dtype=jnp.float32)
    p_mx = p if p.dtype == v.dtype else p.astype(v.dtype)
    acc_sc[...] = alpha * acc_sc[...] + jnp.einsum(
        "hqk,hkd->hqd", p_mx, v,
        preferred_element_type=jnp.float32)                   # (H, tq, D) f32
    m_sc[...] = m_new

    @pl.when(kv == pl.num_programs(2) - 1)
    def _():
        # Exact reciprocal: only H*tq values once per Q tile -> essentially
        # free, and avoids the approx-reciprocal accuracy hit.
        inv_l = 1.0 / l_sc[...]                               # (H, tq, 1) f32
        o_ref[0] = (acc_sc[...] * inv_l).astype(o_ref.dtype)  # (H, tq, D)


# --------------------------------------------------------------------------- #
# Tile / budget selection
# --------------------------------------------------------------------------- #
def _divisors(n):
    ds = set()
    i = 1
    while i * i <= n:
        if n % i == 0:
            ds.add(i)
            ds.add(n // i)
        i += 1
    return ds


def _tile_candidates(n, target):
    """Descending 8-aligned divisors of n that are <= target (plus n itself if
    n <= target).  Falls back to [n] (full extent is always a legal BlockSpec
    second-to-last dim) when no aligned divisor exists.
    TODO(synk): pad N to a multiple of 8/128 and mask the tail instead of the
    full-extent fallback for awkward (non-8-divisible) N."""
    cands = {d for d in _divisors(n) if d % 8 == 0 and d <= target}
    if n <= target:
        cands.add(n)
    if not cands:
        return [n]
    return sorted(cands, reverse=True)


def _vmem_estimate(H, D, tq, nk, in_bytes, out_bytes, p_bytes):
    """Rough per-grid-step VMEM footprint (bytes)."""
    q_blk = 2 * H * tq * D * in_bytes                 # double-buffered Q
    kv_blk = 2 * 2 * H * nk * D * in_bytes            # double-buffered K and V
    o_blk = 2 * H * tq * D * out_bytes                # double-buffered O
    scratch = (H * tq * D * in_bytes                  # scaled Q
               + 2 * H * tq * 4                       # m, l
               + H * tq * D * 4)                      # f32 accumulator
    # In-kernel transients: f32 scores, (s - m) temp, exp output.  This score
    # tile is the dominant term and is budgeted explicitly (perf feedback).
    transients = H * tq * nk * (4 + 4 + p_bytes)
    return q_blk + kv_blk + o_blk + scratch + transients


def _select_tiles(N, H, D, in_bytes, out_bytes, p_bytes, budget, tq_target=512):
    tq_cands = _tile_candidates(N, tq_target)
    nk_cands = _tile_candidates(N, N)

    # Pass 1: full K/V residency per batch element (nk == N): the K/V block
    # index then depends only on b, so K/V is DMA'd once per batch element
    # instead of once per (b, q-tile) pair.  Only accepted with a reasonably
    # large q tile, otherwise per-grid-step overhead dominates.
    for tq in tq_cands:
        if tq < min(256, N):
            break
        if _vmem_estimate(H, D, tq, N, in_bytes, out_bytes, p_bytes) <= budget:
            return tq, N

    # Pass 2: streamed K/V.  Prefer a large KV block (>=512 rows) to amortize
    # the ~0.35 us per-grid-step overhead and lengthen each DMA, then relax.
    # TODO(synk): in this streamed regime, pipeline_mode=pl.Buffered(3) on the
    # K/V specs can further hide DMA latency if per-step compute is short.
    for nk_floor in (min(512, N), min(128, N), 1):
        for tq in tq_cands:
            for nk in nk_cands:
                if nk < nk_floor:
                    break
                if _vmem_estimate(H, D, tq, nk,
                                  in_bytes, out_bytes, p_bytes) <= budget:
                    return tq, nk

    # Last resort: smallest legal tiles (the compiler reports VMEM OOM if even
    # this does not fit).
    return tq_cands[-1], nk_cands[-1]


def _vmem_budget_bytes():
    """Per-generation VMEM budget.  v7x's 64 MiB per TensorCore is the binding
    constraint; v5e/v6e have 128 MiB.  Leave headroom for the compiler."""
    try:
        cap = int(pltpu.get_tpu_info().vmem_capacity_bytes)
    except Exception:
        cap = 64 * 1024 * 1024          # conservative v7x floor
    limit = (cap * 3) // 4              # passed as vmem_limit_bytes
    budget = (limit * 4) // 5           # what the tile selector may plan for
    return limit, budget


def _exp_dtype_for(value_dtype):
    """bf16 exponentials only where the EUP has a bf16 path (v6e / v7x) and the
    data is already bf16; otherwise (v5e, or f32 inputs) keep f32."""
    if jnp.dtype(value_dtype) != jnp.dtype(jnp.bfloat16):
        return jnp.float32
    try:
        kind = jax.devices()[0].device_kind.lower()
    except Exception:
        kind = ""
    if ("v6" in kind) or ("v7" in kind) or ("7x" in kind):
        return jnp.bfloat16
    return jnp.float32


# --------------------------------------------------------------------------- #
# Wrapper
# --------------------------------------------------------------------------- #
def simple_attention(query, key, value, num_heads, mask=None):
    """query/key/value: (B, dim, N) arrays; returns (B, dim, N).

    Matches torch exactly: `.view(B, H, N, D)` on a contiguous (B, dim, N)
    tensor is a flat reinterpretation == jnp.reshape, and so is the final
    `output.contiguous().view(B, -1, N)`."""
    if mask is not None:
        # TODO(synk): masked_fill(-inf) path not implemented in the kernel.
        raise NotImplementedError("mask is not supported by this Pallas kernel")

    B, dim, N = query.shape
    H = num_heads
    D = dim // H

    q = query.reshape(B, H, N, D)
    k = key.reshape(B, H, N, D)
    v = value.reshape(B, H, N, D)

    exp_dtype = _exp_dtype_for(value.dtype)
    in_bytes = jnp.dtype(query.dtype).itemsize
    p_bytes = jnp.dtype(exp_dtype).itemsize

    vmem_limit, vmem_budget = _vmem_budget_bytes()
    tq, nk = _select_tiles(N, H, D, in_bytes, in_bytes, p_bytes, vmem_budget)
    n_q = N // tq
    n_kv = N // nk

    scale = 1.0 / math.sqrt(D)
    kernel = functools.partial(_flash_attention_kernel, scale=scale,
                               exp_dtype=exp_dtype)

    out = pl.pallas_call(
        kernel,
        out_shape=jax.ShapeDtypeStruct((B, H, N, D), query.dtype),
        grid_spec=pltpu.PrefetchScalarGridSpec(
            num_scalar_prefetch=0,
            # All heads fused per grid step.  Batch and Q-tile axes are
            # "parallel" (B*n_q >= 2 keeps both v7x TensorCores busy); the KV
            # reduction axis is last, "arbitrary".  When nk == N the KV axis
            # has a single step and the K/V block index changes only with b,
            # so K/V stays resident in VMEM across all Q tiles of a batch.
            grid=(B, n_q, n_kv),
            in_specs=[
                pl.BlockSpec((1, H, tq, D), lambda b, qi, ki: (b, 0, qi, 0)),
                pl.BlockSpec((1, H, nk, D), lambda b, qi, ki: (b, 0, ki, 0)),
                pl.BlockSpec((1, H, nk, D), lambda b, qi, ki: (b, 0, ki, 0)),
            ],
            out_specs=pl.BlockSpec((1, H, tq, D),
                                   lambda b, qi, ki: (b, 0, qi, 0)),
            scratch_shapes=[
                pltpu.VMEM((H, tq, D), query.dtype),   # scaled Q (hoisted)
                pltpu.VMEM((H, tq, 1), jnp.float32),   # running row max
                pltpu.VMEM((H, tq, 1), jnp.float32),   # running denominator
                pltpu.VMEM((H, tq, D), jnp.float32),   # running accumulator
            ],
        ),
        compiler_params=pltpu.CompilerParams(
            dimension_semantics=("parallel", "parallel", "arbitrary"),
            vmem_limit_bytes=vmem_limit,
        ),
    )(q, k, v)

    # Flat reshape, identical to torch: output.contiguous().view(B, -1, N).
    return out.reshape(B, dim, N)


# --------------------------------------------------------------------------- #
# Reference + self-test
# --------------------------------------------------------------------------- #
def _reference(query, key, value, num_heads):
    B, dim, N = query.shape
    D = dim // num_heads
    q = query.reshape(B, num_heads, N, D)
    k = key.reshape(B, num_heads, N, D)
    v = value.reshape(B, num_heads, N, D)
    s = jnp.einsum("bhnd,bhmd->bhnm", q, k,
                   precision=jax.lax.Precision.HIGHEST) / math.sqrt(D)
    w = jax.nn.softmax(s, axis=-1)
    o = jnp.einsum("bhnm,bhmd->bhnd", w, v,
                   precision=jax.lax.Precision.HIGHEST)
    return o.reshape(B, dim, N)


if __name__ == "__main__":
    B, num_heads, head_dim, N = 2, 4, 8, 8
    dim = num_heads * head_dim  # 32

    key0 = jax.random.PRNGKey(0)
    kq, kk, kv = jax.random.split(key0, 3)
    query = jax.random.normal(kq, (B, dim, N), dtype=jnp.float32)
    keyt = jax.random.normal(kk, (B, dim, N), dtype=jnp.float32)
    value = jax.random.normal(kv, (B, dim, N), dtype=jnp.float32)

    out = simple_attention(query, keyt, value, num_heads)
    jax.block_until_ready(out)

    ref = _reference(query, keyt, value, num_heads)
    assert out.shape == (B, dim, N)
    # f32 statistics + exact finalize divide -> tight tolerance.
    assert jnp.allclose(out, ref, atol=5e-3, rtol=5e-3), (
        float(jnp.max(jnp.abs(out - ref))))

    print("KERNEL_OK")
</pallas_src>

<mosaic_0001>
module attributes {stable_mosaic.version = 11 : i64} {
  func.func @_flash_attention_kernel(%arg0: i32, %arg1: i32, %arg2: i32, %arg3: memref<1x4x8x8xf32, #tpu.memory_space<vmem>>, %arg4: memref<1x4x8x8xf32, #tpu.memory_space<vmem>>, %arg5: memref<1x4x8x8xf32, #tpu.memory_space<vmem>>, %arg6: memref<1x4x8x8xf32, #tpu.memory_space<vmem>>, %arg7: memref<4x8x8xf32, #tpu.memory_space<vmem>>, %arg8: memref<4x8x1xf32, #tpu.memory_space<vmem>>, %arg9: memref<4x8x1xf32, #tpu.memory_space<vmem>>, %arg10: memref<4x8x8xf32, #tpu.memory_space<vmem>>) attributes {dimension_semantics = [#tpu.dimension_semantics<parallel>, #tpu.dimension_semantics<parallel>, #tpu.dimension_semantics<arbitrary>], iteration_bounds = array<i64: 2, 1, 1>, scalar_prefetch = 0 : i64, scratch_operands = 4 : i64, tpu.core_type = #tpu.core_type<tc>, window_params = [{transform_indices = @transform_0, window_bounds = array<i64: 1, 4, 8, 8>}, {transform_indices = @transform_1, window_bounds = array<i64: 1, 4, 8, 8>}, {transform_indices = @transform_2, window_bounds = array<i64: 1, 4, 8, 8>}, {transform_indices = @transform_3, window_bounds = array<i64: 1, 4, 8, 8>}]} {
    %c0_i32 = arith.constant 0 : i32
    %0 = arith.cmpi eq, %arg2, %c0_i32 : i32
    %1 = arith.extui %0 : i1 to i32
    %c0_i32_0 = arith.constant 0 : i32
    %2 = arith.cmpi ne, %1, %c0_i32_0 : i32
    scf.if %2 {
      %c0_34 = arith.constant 0 : index
      %c0_35 = arith.constant 0 : index
      %c0_36 = arith.constant 0 : index
      %c0_37 = arith.constant 0 : index
      %34 = vector.load %arg3[%c0_34, %c0_35, %c0_36, %c0_37] : memref<1x4x8x8xf32, #tpu.memory_space<vmem>>, vector<1x4x8x8xf32>
      %35 = vector.shape_cast %34 : vector<1x4x8x8xf32> to vector<4x8x8xf32>
      %cst_38 = arith.constant 0.353553385 : f32
      %36 = vector.broadcast %cst_38 : f32 to vector<4x8x8xf32>
      %37 = arith.mulf %35, %36 : vector<4x8x8xf32>
      %c0_39 = arith.constant 0 : index
      %c0_40 = arith.constant 0 : index
      %c0_41 = arith.constant 0 : index
      %38 = vector.load %arg7[%c0_39, %c0_40, %c0_41] : memref<4x8x8xf32, #tpu.memory_space<vmem>>, vector<4x8x8xf32>
      tpu.vector_store %arg7[%c0_39, %c0_40, %c0_41], %37 {strides = array<i32>} : memref<4x8x8xf32, #tpu.memory_space<vmem>>, vector<4x8x8xf32>,
      %cst_42 = arith.constant 0xFF800000 : f32
      %39 = vector.broadcast %cst_42 : f32 to vector<4x8x1xf32>
      %c0_43 = arith.constant 0 : index
      %c0_44 = arith.constant 0 : index
      %c0_45 = arith.constant 0 : index
      %40 = vector.load %arg8[%c0_43, %c0_44, %c0_45] : memref<4x8x1xf32, #tpu.memory_space<vmem>>, vector<4x8x1xf32>
      tpu.vector_store %arg8[%c0_43, %c0_44, %c0_45], %39 {strides = array<i32>} : memref<4x8x1xf32, #tpu.memory_space<vmem>>, vector<4x8x1xf32>,
      %cst_46 = arith.constant 0.000000e+00 : f32
      %41 = vector.broadcast %cst_46 : f32 to vector<4x8x1xf32>
      %c0_47 = arith.constant 0 : index
      %c0_48 = arith.constant 0 : index
      %c0_49 = arith.constant 0 : index
      %42 = vector.load %arg9[%c0_47, %c0_48, %c0_49] : memref<4x8x1xf32, #tpu.memory_space<vmem>>, vector<4x8x1xf32>
      tpu.vector_store %arg9[%c0_47, %c0_48, %c0_49], %41 {strides = array<i32>} : memref<4x8x1xf32, #tpu.memory_space<vmem>>, vector<4x8x1xf32>,
      %cst_50 = arith.constant 0.000000e+00 : f32
      %43 = vector.broadcast %cst_50 : f32 to vector<4x8x8xf32>
      %c0_51 = arith.constant 0 : index
      %c0_52 = arith.constant 0 : index
      %c0_53 = arith.constant 0 : index
      %44 = vector.load %arg10[%c0_51, %c0_52, %c0_53] : memref<4x8x8xf32, #tpu.memory_space<vmem>>, vector<4x8x8xf32>
      tpu.vector_store %arg10[%c0_51, %c0_52, %c0_53], %43 {strides = array<i32>} : memref<4x8x8xf32, #tpu.memory_space<vmem>>, vector<4x8x8xf32>,
    } else {
    }
    %c0 = arith.constant 0 : index
    %c0_1 = arith.constant 0 : index
    %c0_2 = arith.constant 0 : index
    %3 = vector.load %arg7[%c0, %c0_1, %c0_2] : memref<4x8x8xf32, #tpu.memory_space<vmem>>, vector<4x8x8xf32>
    %c0_3 = arith.constant 0 : index
    %c0_4 = arith.constant 0 : index
    %c0_5 = arith.constant 0 : index
    %c0_6 = arith.constant 0 : index
    %4 = vector.load %arg4[%c0_3, %c0_4, %c0_5, %c0_6] : memref<1x4x8x8xf32, #tpu.memory_space<vmem>>, vector<1x4x8x8xf32>
    %5 = vector.shape_cast %4 : vector<1x4x8x8xf32> to vector<4x8x8xf32>
    %c0_7 = arith.constant 0 : index
    %c0_8 = arith.constant 0 : index
    %c0_9 = arith.constant 0 : index
    %c0_10 = arith.constant 0 : index
    %6 = vector.load %arg5[%c0_7, %c0_8, %c0_9, %c0_10] : memref<1x4x8x8xf32, #tpu.memory_space<vmem>>, vector<1x4x8x8xf32>
    %7 = vector.shape_cast %6 : vector<1x4x8x8xf32> to vector<4x8x8xf32>
    "tpu.trace_start"() <{level = 10 : i32, message = "hqd,hkd->hqk"}> : () -> ()
    %cst = arith.constant dense<0.000000e+00> : vector<4x8x8xf32>
    %8 = tpu.matmul %3, %5, %cst {dimension_numbers = #tpu.dot_dimension_numbers<[2], [2], [1], [1], [0, 0, 0, 1, 1, 1], [0], [0]>} : vector<4x8x8xf32>, vector<4x8x8xf32>, vector<4x8x8xf32> -> vector<4x8x8xf32>
    "tpu.trace_stop"() : () -> ()
    %c0_11 = arith.constant 0 : index
    %c0_12 = arith.constant 0 : index
    %c0_13 = arith.constant 0 : index
    %9 = vector.load %arg8[%c0_11, %c0_12, %c0_13] : memref<4x8x1xf32, #tpu.memory_space<vmem>>, vector<4x8x1xf32>
    %cst_14 = arith.constant dense<0xFF800000> : vector<4x8xf32>
    %10 = vector.multi_reduction <maximumf>, %8, %cst_14 [2] : vector<4x8x8xf32> to vector<4x8xf32>
    %11 = vector.shape_cast %10 : vector<4x8xf32> to vector<4x8x1xf32>
    %12 = arith.maximumf %9, %11 : vector<4x8x1xf32>
    %13 = arith.subf %9, %12 : vector<4x8x1xf32>
    %14 = math.exp %13 : vector<4x8x1xf32>
    %15 = vector.broadcast %12 : vector<4x8x1xf32> to vector<4x8x8xf32>
    %16 = arith.subf %8, %15 : vector<4x8x8xf32>
    %17 = math.exp %16 : vector<4x8x8xf32>
    %c0_15 = arith.constant 0 : index
    %c0_16 = arith.constant 0 : index
    %c0_17 = arith.constant 0 : index
    %18 = vector.load %arg9[%c0_15, %c0_16, %c0_17] : memref<4x8x1xf32, #tpu.memory_space<vmem>>, vector<4x8x1xf32>
    %19 = arith.mulf %14, %18 : vector<4x8x1xf32>
    %cst_18 = arith.constant dense<0.000000e+00> : vector<4x8xf32>
    %20 = vector.multi_reduction <add>, %17, %cst_18 [2] : vector<4x8x8xf32> to vector<4x8xf32>
    %21 = vector.shape_cast %20 : vector<4x8xf32> to vector<4x8x1xf32>
    %22 = arith.addf %19, %21 : vector<4x8x1xf32>
    %c0_19 = arith.constant 0 : index
    %c0_20 = arith.constant 0 : index
    %c0_21 = arith.constant 0 : index
    %23 = vector.load %arg9[%c0_19, %c0_20, %c0_21] : memref<4x8x1xf32, #tpu.memory_space<vmem>>, vector<4x8x1xf32>
    tpu.vector_store %arg9[%c0_19, %c0_20, %c0_21], %22 {strides = array<i32>} : memref<4x8x1xf32, #tpu.memory_space<vmem>>, vector<4x8x1xf32>,
    %c0_22 = arith.constant 0 : index
    %c0_23 = arith.constant 0 : index
    %c0_24 = arith.constant 0 : index
    %24 = vector.load %arg10[%c0_22, %c0_23, %c0_24] : memref<4x8x8xf32, #tpu.memory_space<vmem>>, vector<4x8x8xf32>
    %25 = vector.broadcast %14 : vector<4x8x1xf32> to vector<4x8x8xf32>
    %26 = arith.mulf %25, %24 : vector<4x8x8xf32>
    "tpu.trace_start"() <{level = 10 : i32, message = "hqk,hkd->hqd"}> : () -> ()
    %cst_25 = arith.constant dense<0.000000e+00> : vector<4x8x8xf32>
    %27 = tpu.matmul %17, %7, %cst_25 {dimension_numbers = #tpu.dot_dimension_numbers<[2], [1], [1], [2], [0, 0, 0, 1, 1, 2], [0], [0]>} : vector<4x8x8xf32>, vector<4x8x8xf32>, vector<4x8x8xf32> -> vector<4x8x8xf32>
    "tpu.trace_stop"() : () -> ()
    %28 = arith.addf %26, %27 : vector<4x8x8xf32>
    %c0_26 = arith.constant 0 : index
    %c0_27 = arith.constant 0 : index
    %c0_28 = arith.constant 0 : index
    %29 = vector.load %arg10[%c0_26, %c0_27, %c0_28] : memref<4x8x8xf32, #tpu.memory_space<vmem>>, vector<4x8x8xf32>
    tpu.vector_store %arg10[%c0_26, %c0_27, %c0_28], %28 {strides = array<i32>} : memref<4x8x8xf32, #tpu.memory_space<vmem>>, vector<4x8x8xf32>,
    %c0_29 = arith.constant 0 : index
    %c0_30 = arith.constant 0 : index
    %c0_31 = arith.constant 0 : index
    %30 = vector.load %arg8[%c0_29, %c0_30, %c0_31] : memref<4x8x1xf32, #tpu.memory_space<vmem>>, vector<4x8x1xf32>
    tpu.vector_store %arg8[%c0_29, %c0_30, %c0_31], %12 {strides = array<i32>} : memref<4x8x1xf32, #tpu.memory_space<vmem>>, vector<4x8x1xf32>,
    %c0_i32_32 = arith.constant 0 : i32
    %31 = arith.cmpi eq, %arg2, %c0_i32_32 : i32
    %32 = arith.extui %31 : i1 to i32
    %c0_i32_33 = arith.constant 0 : i32
    %33 = arith.cmpi ne, %32, %c0_i32_33 : i32
    scf.if %33 {
      %c0_34 = arith.constant 0 : index
      %c0_35 = arith.constant 0 : index
      %c0_36 = arith.constant 0 : index
      %34 = vector.load %arg9[%c0_34, %c0_35, %c0_36] : memref<4x8x1xf32, #tpu.memory_space<vmem>>, vector<4x8x1xf32>
      %cst_37 = arith.constant 1.000000e+00 : f32
      %35 = vector.broadcast %cst_37 : f32 to vector<4x8x1xf32>
      %36 = arith.divf %35, %34 : vector<4x8x1xf32>
      %c0_38 = arith.constant 0 : index
      %c0_39 = arith.constant 0 : index
      %c0_40 = arith.constant 0 : index
      %37 = vector.load %arg10[%c0_38, %c0_39, %c0_40] : memref<4x8x8xf32, #tpu.memory_space<vmem>>, vector<4x8x8xf32>
      %38 = vector.broadcast %36 : vector<4x8x1xf32> to vector<4x8x8xf32>
      %39 = arith.mulf %37, %38 : vector<4x8x8xf32>
      %c0_41 = arith.constant 0 : index
      %c0_42 = arith.constant 0 : index
      %c0_43 = arith.constant 0 : index
      %c0_44 = arith.constant 0 : index
      %40 = vector.load %arg6[%c0_41, %c0_42, %c0_43, %c0_44] : memref<1x4x8x8xf32, #tpu.memory_space<vmem>>, vector<1x4x8x8xf32>
      %41 = vector.shape_cast %40 : vector<1x4x8x8xf32> to vector<4x8x8xf32>
      %42 = vector.shape_cast %39 : vector<4x8x8xf32> to vector<1x4x8x8xf32>
      tpu.vector_store %arg6[%c0_41, %c0_42, %c0_43, %c0_44], %42 {strides = array<i32>} : memref<1x4x8x8xf32, #tpu.memory_space<vmem>>, vector<1x4x8x8xf32>,
    } else {
    }
    return
  }
  func.func @transform_0(%arg0: i32, %arg1: i32, %arg2: i32) -> (i32, i32, i32, i32) {
    %c0_i32 = arith.constant 0 : i32
    %c0_i32_0 = arith.constant 0 : i32
    %c0_i32_1 = arith.constant 0 : i32
    return %arg0, %c0_i32, %arg1, %c0_i32_0 : i32, i32, i32, i32
  }
  func.func @transform_1(%arg0: i32, %arg1: i32, %arg2: i32) -> (i32, i32, i32, i32) {
    %c0_i32 = arith.constant 0 : i32
    %c0_i32_0 = arith.constant 0 : i32
    %c0_i32_1 = arith.constant 0 : i32
    return %arg0, %c0_i32, %arg2, %c0_i32_0 : i32, i32, i32, i32
  }
  func.func @transform_2(%arg0: i32, %arg1: i32, %arg2: i32) -> (i32, i32, i32, i32) {
    %c0_i32 = arith.constant 0 : i32
    %c0_i32_0 = arith.constant 0 : i32
    %c0_i32_1 = arith.constant 0 : i32
    return %arg0, %c0_i32, %arg2, %c0_i32_0 : i32, i32, i32, i32
  }
  func.func @transform_3(%arg0: i32, %arg1: i32, %arg2: i32) -> (i32, i32, i32, i32) {
    %c0_i32 = arith.constant 0 : i32
    %c0_i32_0 = arith.constant 0 : i32
    %c0_i32_1 = arith.constant 0 : i32
    return %arg0, %c0_i32, %arg1, %c0_i32_0 : i32, i32, i32, i32
  }
}

</mosaic_0001>

<bundles_post_ra>
// kernel: tpu_custom_call.1
= control target key start
LH: loop header
LB: loop body
LE: loop exit
PB: predicated region body
PF: predicated region fallthrough
CT: control target
= control target key end

     0   :  { %s2080_s0 = inlined_call_operand.hbm [shape: f32[2,4,8,8], index: 0, kind: input, shape index: {}]   ;;  %s2081_s1 = inlined_call_operand.hbm [shape: f32[2,4,8,8], index: 1, kind: input, shape index: {}]   ;;  %s2082_s2 = inlined_call_operand.hbm [shape: f32[2,4,8,8], index: 2, kind: input, shape index: {}]   ;;  %s2083_s3 = inlined_call_operand.hbm [shape: f32[2,4,8,8], index: 3, kind: output, shape index: {}]  }
   0x1   :  { %2093 = sst [smem:[#allocation19_spill]] %s2081_s1 }
   0x2   :  { %8 = vsyncpa [#allocation7], 0 }
   0x3   :  { %10 = vsyncpa [#allocation7 + $0x1], 0 }
   0x4   :  { %11 = vsyncpa [#allocation10], 0 }
   0x5   :  { %13 = vsyncpa [#allocation10 + $0x1], 0 }
   0x6   :  { %14 = vsyncpa [#allocation8], 0 }
   0x7   :  { %16 = vsyncpa [#allocation8 + $0x1], 0  ;;  %s1676_s12 = smov 0   ;;  %s1678_s13 = smov 0  }
   0x8   :  { %s1680_s14 = smov 0   ;;  %s1682_s15 = smov 0  }
   0x9   :  { %s1684_s16 = smov 0   ;;  %s1686_s17 = smov 0  }
   0xa LB: > { %2094 = sst [smem:[#allocation16_spill]] %s1638_s16  ;;  %s1707_s18 = sadd.s32 4294967295, %s1642_s17   ;;  %s1642_s17 = sphi %s1686_s17, %s22_s17   ;;  %s1638_s16 = sphi %s1684_s16, %s2117_s16   ;;  %s1634_s15 = sphi %s1682_s15, %s2116_s15   ;;  %s1630_s14 = sphi %s1680_s14, %s2120_s14   ;;  %s1626_s13 = sphi %s1678_s13, %s2119_s13   ;;  %s1622_s12 = sphi %s1676_s12, %s2118_s12  }
   0xb   : > { %s1266_s19 = sadd.s32 4294967294, %s1642_s17   ;;  %s41_s20 = sadd.s32 1, %s1638_s16 }
   0xc   : > { %s50_s21 = sadd.s32 1, %s1630_s14  ;;  %p43_p0 = scmp.ge.s32.totalorder %s41_s20, 2 }
   0xd   : > { %p57_p1 = scmp.ne.s32.totalorder %s1630_s14, %s1626_s13  ;;  %p58_p2 = scmp.eq.s32.totalorder %s1642_s17, 0 }
   0xe   : > { %p63_p3 = scmp.ne.s32.totalorder %s1626_s13, %s1622_s12  ;;  %s2122_s20 = smov (%p43_p0, %s41_s20), 0 }
   0xf   : > { %2095 = sst [smem:[#allocation17_spill]] %s2122_s20  ;;  %p1719_p4 = por %p58_p2, %p57_p1 }
  0x10   : > { %p64_p5 = scmp.eq.s32.totalorder %s1707_s18, 0  ;;  %s45_s23 = ssub.s32 %s1638_s16, %s2122_s20 }
  0x11   : > { %p145_p6 = scmp.eq.s32.totalorder %s1707_s18, 1  ;;  %p48_p7 = scmp.eq.s32.totalorder %s45_s23, 0 }
  0x12   : > { %p1727_p8 = por %p64_p5, %p63_p3  ;;  %p151_p10 = scmp.eq.s32.totalorder %s1266_s19, 1 }
  0x13   : > { %p1731_p9 = por %p145_p6, %p57_p1  ;;  %p1382_p13 = scmp.lt.s32.totalorder %s1642_s17, 2 }
  0x14   : > { %s2097_s24 = scalar_select %p1727_p8, 1, 0 }
  0x15   : > { %s2098_s25 = scalar_select %p1731_p9, 1, 0 }
  0x16   : > { %s1736_s26 = scalar_select %p48_p7, %s1630_s14, %s50_s21  }
  0x17   : > { %p1738_p11 = por %p151_p10, %p63_p3  ;;  %s2086_s28 = sand.u32 1, %s1630_s14  }
  0x18   : > { %2099 = sst [smem:[#allocation18_spill]] %s1736_s26  ;;  %s1747_s29 = sshll.u32 %s2086_s28, 5 }
  0x19   : > { %s2100_s27 = scalar_select %p1738_p11, 1, 0 }
  0x1a   : > { %s1750_s30 = sshll.u32 %s1638_s16, 9  ;;  %p1754_p0 = pnand %p1382_p13, %p1719_p4 }
  0x1b   : > { %s193_s5 = sand.u32 1, %s1642_s17   ;;  %s2102_s1 = sld [smem:[#allocation19_spill]] }
  0x1c   : > { %s197_s9 = scalar_lea.vmem [#allocation9], %s1747_s29  ;;  %s1770_s11 = scalar_lea.sflag [#allocation10], %s193_s5 }
  0x1d   : > { %s205_s10 = sshll.u32 %s197_s9, 4  ;;  %p1776_p4 = pneg %p1754_p0  ;;  %s1767_s10 = int_to_ptr.vmem [resolvable:$true] %s205_s10 }
  0x21   : > { %s1763_s8 = scalar_lea.hbm %s2102_s1, %s1750_s30  ;;  %s1471_s6 = scalar_lea.hbm %s2102_s1, 1024 }
  0x22   : > { %s1466_s19 = scalar_lea.hbm %s1763_s8, 512  ;;  %p1472_p7 = scmp.lt.u32.totalorder %s1763_s8, %s2102_s1 }
  0x23   : > { %p1467_p3 = scmp.ne.s32.totalorder %s1763_s8, %s1466_s19  ;;  %p1473_p10 = scmp.lt.u32.totalorder %s1471_s6, %s1466_s19 }
  0x24   : > { %p1475_p12 = scmp.lt.u32.totalorder %s1466_s19, %s1763_s8 }
  0x25   : > { %p1469_p5 = pnand %p1776_p4, %p1467_p3  ;;  %p1474_p13 = por %p1473_p10, %p1472_p7 }
  0x27   : > { %p1470_p6 = pneg %p1469_p5  ;;  %p1476_p1 = por %p1475_p12, %p1474_p13 }
  0x29   : > { %p1477_p2 = pnand %p1476_p1, %p1470_p6 }
  0x2b   : > { %1480 = shalt.err (!%p1477_p2)
}
  0x2c   : > { %s1481_s5 = scalar_lea.vmem %s1767_s10, 512  ;;  %s1644_s22 = smov [#allocation9]  }
  0x2d   : > { %p1482_p3 = scmp.ne.s32.totalorder %s1767_s10, %s1481_s5  ;;  %s1486_s23 = sshll.u32 %s1644_s22, 4  ;;  %s1487_s23 = int_to_ptr.vmem [resolvable:$false] %s1486_s23 }
  0x2e   : > { %s1488_s7 = scalar_lea.vmem %s1487_s23, 1024  ;;  %p1489_p9 = scmp.lt.s32.totalorder %s1767_s10, %s1487_s23 }
  0x2f   : > { %p1484_p5 = pnand %p1482_p3, %p1776_p4  ;;  %p1490_p8 = scmp.lt.s32.totalorder %s1488_s7, %s1481_s5 }
  0x31   : > { %p1485_p11 = pneg %p1484_p5  ;;  %p1491_p7 = por %p1490_p8, %p1489_p9 }
  0x33   : > { %p1492_p10 = pnand %p1491_p7, %p1485_p11 }
  0x35   : > { %1495 = shalt.err (!%p1492_p10)
}
  0x36   : > { %s2087_s19 = smov 128   ;;  %s2089_s6 = smov 8  }
  0x37   : > { %1374 = dma.hbm_to_vmem [thread:$0]  (!%p1754_p0), %s1763_s8, 512, %s1767_s10, %s1770_s11, %s2087_s19, %s2087_s19, %s2089_s6  }
  0x38   : > { %p2104_p8 = scmp.lt.s32.totalorder %s1642_s17, 3  ;;  %p2105_p9 = scmp.ge.s32.totalorder %s1642_s17, 1 }
  0x39   : > { %s1815_s23 = scalar_lea.hbm %s2080_s0, %s1750_s30  ;;  %s175_s7 = scalar_lea.vmem [#allocation6], %s1747_s29 }
  0x3a   : > { %p1807_p11 = pnand %p2105_p9, %p2104_p8  ;;  %s183_s28 = sshll.u32 %s175_s7, 4  ;;  %s1818_s28 = int_to_ptr.vmem [resolvable:$true] %s183_s28 }
  0x3b   : > { %s1824_s19 = scalar_lea.hbm %s2082_s2, %s1750_s30  ;;  %s2107_s6 = sand.u32 1, %s1630_s14  }
  0x3c   : > { %s2106_s9 = scalar_select %p1807_p11, 1, 0 }
  0x3d   : > { %s1828_s1 = scalar_lea.sflag [#allocation7], %s2107_s6  ;;  %s1496_s20 = scalar_lea.hbm %s1815_s23, 512 }
  0x3e   : > { %p1497_p12 = scmp.ne.s32.totalorder %s1815_s23, %s1496_s20  ;;  %s1501_s16 = scalar_lea.hbm %s2080_s0, 1024 }
  0x3f   : > { %p1502_p6 = scmp.lt.u32.totalorder %s1815_s23, %s2080_s0  ;;  %p1503_p13 = scmp.lt.u32.totalorder %s1501_s16, %s1496_s20 }
  0x40   : > { %p1499_p1 = pnand %p1497_p12, %p1776_p4  ;;  %p1505_p5 = scmp.lt.u32.totalorder %s1496_s20, %s1815_s23 }
  0x41   : > { %p1504_p3 = por %p1503_p13, %p1502_p6 }
  0x42   : > { %p1500_p2 = pneg %p1499_p1 }
  0x43   : > { %p1506_p7 = por %p1505_p5, %p1504_p3 }
  0x45   : > { %p1507_p10 = pnand %p1506_p7, %p1500_p2 }
  0x47   : > { %1510 = shalt.err (!%p1507_p10)
}
  0x48   : > { %s1511_s30 = scalar_lea.vmem %s1818_s28, 512  ;;  %s1647_s6 = smov [#allocation6]  }
  0x49   : > { %p1512_p8 = scmp.ne.s32.totalorder %s1818_s28, %s1511_s30  ;;  %s1516_s8 = sshll.u32 %s1647_s6, 4  ;;  %s1517_s8 = int_to_ptr.vmem [resolvable:$false] %s1516_s8 }
  0x4a   : > { %s1518_s26 = scalar_lea.vmem %s1517_s8, 1024  ;;  %p1519_p1 = scmp.lt.s32.totalorder %s1818_s28, %s1517_s8 }
  0x4b   : > { %p1514_p9 = pnand %p1512_p8, %p1776_p4  ;;  %p1520_p11 = scmp.lt.s32.totalorder %s1518_s26, %s1511_s30 }
  0x4d   : > { %p1515_p12 = pneg %p1514_p9  ;;  %p1521_p6 = por %p1520_p11, %p1519_p1 }
  0x4f   : > { %p1522_p13 = pnand %p1521_p6, %p1515_p12 }
  0x51   : > { %1525 = shalt.err (!%p1522_p13)
}
  0x52   : > { %s2108_s16 = smov 8   ;;  %s2109_s20 = smov 128  }
  0x53   : > { %1371 = dma.hbm_to_vmem [thread:$0]  (!%p1754_p0), %s1815_s23, 512, %s1818_s28, %s1828_s1, %s2109_s20, %s2109_s20, %s2108_s16  }
  0x54   : > { %s219_s10 = scalar_lea.vmem [#allocation11], %s1747_s29  ;;  %s1526_s22 = scalar_lea.hbm %s1824_s19, 512 }
  0x55   : > { %s227_s5 = sshll.u32 %s219_s10, 4  ;;  %p1527_p11 = scmp.ne.s32.totalorder %s1824_s19, %s1526_s22  ;;  %s1856_s5 = int_to_ptr.vmem [resolvable:$true] %s227_s5 }
  0x56   : > { %s1531_s6 = scalar_lea.hbm %s2082_s2, 1024  ;;  %p1532_p5 = scmp.lt.u32.totalorder %s1824_s19, %s2082_s2 }
  0x57   : > { %p1529_p2 = pnand %p1527_p11, %p1776_p4  ;;  %p1533_p7 = scmp.lt.u32.totalorder %s1531_s6, %s1526_s22 }
  0x58   : > { %p1535_p8 = scmp.lt.u32.totalorder %s1526_s22, %s1824_s19 }
  0x59   : > { %p1530_p3 = pneg %p1529_p2  ;;  %p1534_p10 = por %p1533_p7, %p1532_p5 }
  0x5b   : > { %p1536_p9 = por %p1535_p8, %p1534_p10 }
  0x5d   : > { %p1537_p12 = pnand %p1536_p9, %p1530_p3 }
  0x5f   : > { %1540 = shalt.err (!%p1537_p12)
}
  0x60   : > { %s1541_s1 = scalar_lea.vmem %s1856_s5, 512  ;;  %s1648_s28 = smov [#allocation11]  }
  0x61   : > { %p1542_p1 = scmp.ne.s32.totalorder %s1856_s5, %s1541_s1  ;;  %s1546_s29 = sshll.u32 %s1648_s28, 4  ;;  %s1547_s29 = int_to_ptr.vmem [resolvable:$false] %s1546_s29 }
  0x62   : > { %s1548_s23 = scalar_lea.vmem %s1547_s29, 1024  ;;  %p1549_p11 = scmp.lt.s32.totalorder %s1856_s5, %s1547_s29 }
  0x63   : > { %p1544_p6 = pnand %p1542_p1, %p1776_p4  ;;  %p1550_p2 = scmp.lt.s32.totalorder %s1548_s23, %s1541_s1 }
  0x65   : > { %p1545_p13 = pneg %p1544_p6  ;;  %p1551_p5 = por %p1550_p2, %p1549_p11 }
  0x67   : > { %p1552_p7 = pnand %p1551_p5, %p1545_p13 }
  0x69   : > { %1555 = shalt.err (!%p1552_p7)
}
  0x6a   : > { %1377 = dma.hbm_to_vmem [thread:$0]  (!%p1754_p0), %s1824_s19, 512, %s1856_s5, %s1770_s11, %s2109_s20, %s2109_s20, %s2108_s16  }
  0x6b   : > { %p2110_p4 = scmp.ne.s32.totalorder %s2106_s9, 0 }
  0x6c   : > { %s1886_s21 = sand.u32 (!%p2110_p4), 1, %s1626_s13   ;;  %p2111_p3 = scmp.ne.s32.totalorder (!%p2110_p4), %s2097_s24, 0 }
  0x6d   : > { %239 = sbr.rel (%p2110_p4) target bundleno = 953 (0x3b9), region = 32  ;;  %s1889_s10 = sshll.u32 (!%p2110_p4), %s1886_s21, 5 }
  0x6e   : > { %s242_s4 = scalar_lea.sflag (!%p2110_p4), [#allocation7], %s1886_s21  ;;  %s1893_s22 = scalar_lea.vmem (!%p2110_p4), [#allocation6], %s1889_s10 }
  0x74   : > { %1609 = dma.done.wait (%p2111_p3), %s242_s4, 512  }
  0x75   : > { %1611 = vsyncadd (%p2111_p3), %s242_s4, 4294966784  ;;  %s250_s11 = sand.u32 1, %s1707_s18   ;;  %s1901_s9 = scalar_lea.vmem [#allocation9], %s1889_s10 }
  0x76   : > { %s251_s19 = scalar_lea.sflag [#allocation10], %s250_s11 }
  0x77   : > { %1613 = dma.done.wait (%p2111_p3), %s251_s19, 1024  }
  0x78   : > { %1615 = vsyncadd (%p2111_p3), %s251_s19, 4294966272  ;;  %vm308_vm0 = vcmask 64512   ;;  %v1649_v0 = vmov 0.0   ;;  %vm1650_vm1 = vmmov 0   ;;  %v330_v1 = vld [vmem:[%s1901_s9] sm:$0xff]  ;;  %v331_v3 = vld [vmem:[%s1901_s9 + $0x8] sm:$0xff] }
  0x79   : > { %1320 = vmatprep.subr.mxu0 %v1649_v0  ;;  %322 = vst.msk [vmem:[#allocation5] sm:$0xff] %vm308_vm0, %v1649_v0  ;;  %323 = vst.msk [vmem:[#allocation5 + $0x8] sm:$0xff] %vm308_vm0, %v1649_v0  ;;  %1322 = vmatprep.mubr.msk.f32.mxu0 %vm1650_vm1, %v1649_v0  ;;  %v300_v2 = vld [vmem:[%s1893_s22] sm:$0xff]  ;;  %v301_v5 = vld [vmem:[%s1893_s22 + $0x8] sm:$0xff]  ;;  %vm313_vm2 = vcmask 7168   ;;  %v1651_v17 = vmov -inf  }
  0x7a   : > { %324 = vst.msk [vmem:[#allocation5 + $0x10] sm:$0xff] %vm308_vm0, %v1649_v0  ;;  %325 = vst.msk [vmem:[#allocation5 + $0x18] sm:$0xff] %vm308_vm0, %v1649_v0  ;;  %1325 = vmatprep.subr.mxu1 %v1649_v0  ;;  %1327 = vmatprep.mubr.msk.f32.mxu1 %vm1650_vm1, %v1649_v0  ;;  %v304_v4 = vmul.f32 0.35355338, %v300_v2  ;;  %v302_v6 = vld [vmem:[%s1893_s22 + $0x10] sm:$0xff]  ;;  %v303_v9 = vld [vmem:[%s1893_s22 + $0x18] sm:$0xff] }
  0x7b   : > { %1321 = vmatpush3.xpose.msk.msra.mxu0 %vm308_vm0, %v330_v1  ;;  %1326 = vmatpush3.xpose.msk.msra.mxu1 %vm308_vm0, %v331_v3  ;;  %v305_v7 = vmul.f32 0.35355338, %v301_v5  ;;  %v306_v8 = vmul.f32 0.35355338, %v302_v6  ;;  %v307_v10 = vmul.f32 0.35355338, %v303_v9 }
  0x7c   : > { %1330 = vmatprep.subr.mxu0 %v1649_v0  ;;  %1335 = vmatprep.subr.mxu1 %v1649_v0  ;;  %309 = vst.msk [vmem:[#allocation2] sm:$0xff] %vm308_vm0, %v304_v4  ;;  %v332_v11 = vld [vmem:[%s1901_s9 + $0x10] sm:$0xff]  ;;  %v333_v13 = vld [vmem:[%s1901_s9 + $0x18] sm:$0xff]  ;;  %v1652_v30 = vmov 0   ;;  %s263_s18 = scalar_lea.vmem [#allocation11], %s1889_s10  ;;  %s295_s24 = scalar_lea.vmem [#allocation12], %s1889_s10 }
  0x7d   : > { %310 = vst.msk [vmem:[#allocation2 + $0x8] sm:$0xff] %vm308_vm0, %v305_v7  ;;  %311 = vst.msk [vmem:[#allocation2 + $0x10] sm:$0xff] %vm308_vm0, %v306_v8  ;;  %1440 = vset.pattern.permute.xlu0 %v1652_v30  ;;  %1441 = vset.pattern.permute.xlu1 %v1652_v30  ;;  %v334_v47 = vld [vmem:[%s263_s18] sm:$0xff]  ;;  %v335_v48 = vld [vmem:[%s263_s18 + $0x8] sm:$0xff]  ;;  %s1130_s16 = sshll.u32 %s295_s24, 4  ;;  %s1303_s20 = sshll.u32 %s1634_s15, 9  ;;  %s2024_s16 = int_to_ptr.vmem [resolvable:$true] %s1130_s16 }
  0x7e   : > { %312 = vst.msk [vmem:[#allocation2 + $0x18] sm:$0xff] %vm308_vm0, %v307_v10  ;;  %v336_v60 = vld [vmem:[%s263_s18 + $0x10] sm:$0xff]  ;;  %v337_v1 = vld [vmem:[%s263_s18 + $0x18] sm:$0xff]  ;;  %s2030_s30 = scalar_lea.hbm %s2083_s3, %s1303_s20  ;;  %s1116_s6 = scalar_lea.sflag [#allocation8], %s1886_s21 }
  0x7f   : > { %314 = vst.msk [vmem:[#allocation3] sm:$0xff] %vm313_vm2, %v1651_v17  ;;  %315 = vst.msk [vmem:[#allocation3 + $0x8] sm:$0xff] %vm313_vm2, %v1651_v17  ;;  %s1556_s8 = scalar_lea.vmem %s2024_s16, 512  ;;  %p2112_p10 = scmp.ne.s32.totalorder %s2098_s25, 0 }
  0x80   : > { %316 = vst.msk [vmem:[#allocation3 + $0x10] sm:$0xff] %vm313_vm2, %v1651_v17  ;;  %317 = vst.msk [vmem:[#allocation3 + $0x18] sm:$0xff] %vm313_vm2, %v1651_v17  ;;  %p1557_p0 = scmp.ne.s32.totalorder %s2024_s16, %s1556_s8  ;;  %s1653_s15 = smov [#allocation12]  }
  0x81   : > { %318 = vst.msk [vmem:[#allocation4] sm:$0xff] %vm313_vm2, %v1649_v0  ;;  %319 = vst.msk [vmem:[#allocation4 + $0x8] sm:$0xff] %vm313_vm2, %v1649_v0  ;;  %s1560_s26 = sshll.u32 %s1653_s15, 4  ;;  %s1561_s26 = int_to_ptr.vmem [resolvable:$false] %s1560_s26 }
  0x82   : > { %320 = vst.msk [vmem:[#allocation4 + $0x10] sm:$0xff] %vm313_vm2, %v1649_v0  ;;  %321 = vst.msk [vmem:[#allocation4 + $0x18] sm:$0xff] %vm313_vm2, %v1649_v0  ;;  %p1558_p8 = pnand %p1557_p0, %p2112_p10  ;;  %s1562_s1 = scalar_lea.vmem %s1561_s26, 1024 }
  0x83   : > { %v326_v12 = vld [vmem:[#allocation2] sm:$0xff]  ;;  %p1563_p12 = scmp.lt.s32.totalorder %s2024_s16, %s1561_s26  ;;  %p1564_p1 = scmp.lt.s32.totalorder %s1562_s1, %s1556_s8 }
  0x84   : > { %1323 = vmatmul.mubr.msk.f32.vlgmr.msra.gmra.mrb[0].mxu0 %vm308_vm0, %v326_v12  ;;  %v327_v14 = vld [vmem:[#allocation2 + $0x8] sm:$0xff]  ;;  %v328_v15 = vld [vmem:[#allocation2 + $0x10] sm:$0xff]  ;;  %p1559_p9 = pneg %p1558_p8 }
  0x85   : > { %1328 = vmatmul.mubr.msk.f32.vlgmr.msra.gmra.mrb[0].mxu1 %vm308_vm0, %v327_v14  ;;  %1331 = vmatpush3.xpose.msk.msra.mxu0 %vm308_vm0, %v332_v11  ;;  %v329_v16 = vld [vmem:[#allocation2 + $0x18] sm:$0xff]  ;;  %p1565_p6 = por %p1564_p1, %p1563_p12 }
  0x86   : > { %1332 = vmatprep.mubr.msk.f32.mxu0 %vm1650_vm1, %v1649_v0  ;;  %1336 = vmatpush3.xpose.msk.msra.mxu1 %vm308_vm0, %v333_v13  ;;  %v1969_v31 = vld [vmem:[#allocation3] sm:$0xff]  ;;  %v1974_v34 = vld [vmem:[#allocation3 + $0x8] sm:$0xff] }
  0x87   : > { %1337 = vmatprep.mubr.msk.f32.mxu1 %vm1650_vm1, %v1649_v0  ;;  %1340 = vmatprep.subr.mxu0 %v1649_v0  ;;  %v1976_v35 = vld [vmem:[#allocation3 + $0x10] sm:$0xff]  ;;  %v1985_v41 = vld [vmem:[#allocation3 + $0x18] sm:$0xff]  ;;  %p1566_p13 = pnand %p1565_p6, %p1559_p9 }
  0x88   : > { %1333 = vmatmul.mubr.msk.f32.vlgmr.msra.gmra.mrb[2].mxu0 %vm308_vm0, %v328_v15  ;;  %1345 = vmatprep.subr.mxu1 %v1649_v0  ;;  %v707_v15 = vld [vmem:[#allocation4] sm:$0xff] }
  0x89   : > { %1338 = vmatmul.mubr.msk.f32.vlgmr.msra.gmra.mrb[2].mxu1 %vm308_vm0, %v329_v16  ;;  %1342 = vmatprep.mubr.msk.f32.mxu0 %vm1650_vm1, %v1649_v0 }
  0x8a   : > { %1347 = vmatprep.mubr.msk.f32.mxu1 %vm1650_vm1, %v1649_v0  ;;  %1341 = vmatpush3.msra.mxu0 %v334_v47 }
  0x8b   : > { %1350 = vmatprep.subr.mxu0 %v1649_v0  ;;  %1346 = vmatpush3.msra.mxu1 %v335_v48 }
  0x8c   : > { %1355 = vmatprep.subr.mxu1 %v1649_v0 }
 0x157   : > { %v411_v18 = vpop.f32.mrb[0].mxu0 }
 0x158   : > { %v1324_v19 = vpop.f32.mrb[1].mxu0  ;;  %v647_v20 = vsel %vm308_vm0, %v411_v18, -inf  ;;  %v487_v21 = vpop.f32.mrb[0].mxu1 }
 0x159   : > { %648 = vmax.xlane.f32.xlu0 %v647_v20  ;;  %v1329_v22 = vpop.f32.mrb[1].mxu1  ;;  %v650_v23 = vsel %vm308_vm0, %v487_v21, -inf }
 0x15a   : > { %v709_v22 = vld [vmem:[#allocation4 + $0x10] sm:$0xff] }
 0x15b   : > { %v563_v24 = vpop.f32.mrb[2].mxu0 }
 0x15c   : > { %v1334_v25 = vpop.f32.mrb[3].mxu0  ;;  %v653_v26 = vsel %vm308_vm0, %v563_v24, -inf  ;;  %v639_v27 = vpop.f32.mrb[2].mxu1 }
 0x15d   : > { %651 = vmax.xlane.f32.xlu0 %v650_v23  ;;  %654 = vmax.xlane.f32.xlu1 %v653_v26  ;;  %v1339_v28 = vpop.f32.mrb[3].mxu1  ;;  %v656_v29 = vsel %vm308_vm0, %v639_v27, -inf  ;;  %v710_v26 = vld [vmem:[#allocation4 + $0x18] sm:$0xff] }
 0x161   : > { %657 = vmax.xlane.f32.xlu1 %v656_v29 }
 0x1e6   : > { %v649_v32 = vpop.xlane.xlu0 %648 }
 0x1e7   : > { %v1972_v33 = vmax.f32 %v1969_v31, %v649_v32 }
 0x1e9   : > { %v663_v36 = vsub.f32 %v1969_v31, %v1972_v33  ;;  %1064 = vst.msk [vmem:[#allocation3] sm:$0xff] %vm313_vm2, %v1972_v33  ;;  %677 = vperm.xlu0 %1440, %v1972_v33  }
 0x1ea   : > { %v652_v37 = vpop.xlane.xlu0 %651  ;;  %v655_v38 = vpop.xlane.xlu1 %654 }
 0x1eb   : > { %v660_v39 = vmax.f32 %v1974_v34, %v652_v37  ;;  %v661_v40 = vmax.f32 %v1976_v35, %v655_v38  ;;  %v667_v9 = vmul.f32 1.442695, %v663_v36 }
 0x1ed   : > { %v664_v42 = vsub.f32 %v1974_v34, %v660_v39  ;;  %1065 = vst.msk [vmem:[#allocation3 + $0x8] sm:$0xff] %vm313_vm2, %v660_v39  ;;  %682 = vperm.xlu1 %1441, %v660_v39   ;;  %v665_v43 = vsub.f32 %v1976_v35, %v661_v40  ;;  %1066 = vst.msk [vmem:[#allocation3 + $0x10] sm:$0xff] %vm313_vm2, %v661_v40  ;;  %v736_v39 = vld [vmem:[#allocation5] sm:$0xff] }
 0x1ee   : > { %v658_v44 = vpop.xlane.xlu1 %657 }
 0x1ef   : > { %v662_v45 = vmax.f32 %v1985_v41, %v658_v44  ;;  %v669_v7 = vmul.f32 1.442695, %v664_v42  ;;  %v737_v42 = vld [vmem:[#allocation5 + $0x8] sm:$0xff] }
 0x1f1   : > { %687 = vperm.xlu1 %1441, %v661_v40   ;;  %v666_v46 = vsub.f32 %v1985_v41, %v662_v45  ;;  %1067 = vst.msk [vmem:[#allocation3 + $0x18] sm:$0xff] %vm313_vm2, %v662_v45 }
 0x1f3   : > { %v673_v10 = vmul.f32 1.442695, %v666_v46 }
 0x1f5   : > { %692 = vperm.xlu1 %1441, %v662_v45  }
 0x268   : > { %v678_v49 = vpop.permute.xlu0 %677 }
 0x269   : > { %v695_v50 = vsub.f32 %v411_v18, %v678_v49  ;;  %v708_v18 = vld [vmem:[#allocation4 + $0x8] sm:$0xff]  ;;  %v738_v49 = vld [vmem:[#allocation5 + $0x10] sm:$0xff] }
 0x26b   : > { %v699_v51 = vmul.f32 1.442695, %v695_v50 }
 0x26c   : > { %v683_v52 = vpop.permute.xlu1 %682 }
 0x26d   : > { %1442 = vpow2.f32 %v699_v51  ;;  %v696_v53 = vsub.f32 %v487_v21, %v683_v52 }
 0x26f   : > { %v701_v54 = vmul.f32 1.442695, %v696_v53 }
 0x270   : > { %v688_v55 = vpop.permute.xlu1 %687 }
 0x271   : > { %1444 = vpow2.f32 %v701_v54  ;;  %v697_v56 = vsub.f32 %v563_v24, %v688_v55  ;;  %v739_v54 = vld [vmem:[#allocation5 + $0x18] sm:$0xff] }
 0x273   : > { %v703_v57 = vmul.f32 1.442695, %v697_v56 }
 0x274   : > { %v693_v58 = vpop.permute.xlu1 %692 }
 0x275   : > { %1446 = vpow2.f32 %v703_v57  ;;  %v698_v59 = vsub.f32 %v639_v27, %v693_v58 }
 0x277   : > { %v1443_v61 = vpop.eup %1442  ;;  %v705_v62 = vmul.f32 1.442695, %v698_v59 }
 0x278   : > { %1343 = vmatmul.mubr.msk.f32.vlgmr.msra.gmra.mrb[4].mxu0 %vm308_vm0, %v1443_v61  ;;  %v715_v63 = vsel %vm308_vm0, %v1443_v61, 0.0 }
 0x279   : > { %1448 = vpow2.f32 %v705_v62  ;;  %716 = vadd.xlane.f32.xlu1 %v715_v63  ;;  %1351 = vmatpush3.msra.mxu0 %v336_v60 }
 0x27a   : > { %1352 = vmatprep.mubr.msk.f32.mxu0 %vm1650_vm1, %v1649_v0  ;;  %1450 = vpow2.f32 %v669_v7 }
 0x27b   : > { %v1445_v2 = vpop.eup %1444  ;;  %1452 = vpow2.f32 %v667_v9 }
 0x27c   : > { %1348 = vmatmul.mubr.msk.f32.vlgmr.msra.gmra.mrb[4].mxu1 %vm308_vm0, %v1445_v2  ;;  %v718_v3 = vsel %vm308_vm0, %v1445_v2, 0.0 }
 0x27d   : > { %719 = vadd.xlane.f32.xlu0 %v718_v3  ;;  %1356 = vmatpush3.msra.mxu1 %v337_v1 }
 0x27e   : > { %1357 = vmatprep.mubr.msk.f32.mxu1 %vm1650_vm1, %v1649_v0  ;;  %v671_v0 = vmul.f32 1.442695, %v665_v43 }
 0x27f   : > { %v1447_v4 = vpop.eup %1446 }
 0x280   : > { %1353 = vmatmul.mubr.msk.f32.vlgmr.msra.gmra.mrb[6].mxu0 %vm308_vm0, %v1447_v4  ;;  %v721_v5 = vsel %vm308_vm0, %v1447_v4, 0.0  ;;  %1454 = vpow2.f32 %v671_v0 }
 0x281   : > { %722 = vadd.xlane.f32.xlu1 %v721_v5  ;;  %1456 = vpow2.f32 %v673_v10 }
 0x283   : > { %v1449_v6 = vpop.eup %1448 }
 0x284   : > { %1358 = vmatmul.mubr.msk.f32.vlgmr.msra.gmra.mrb[6].mxu1 %vm308_vm0, %v1449_v6  ;;  %v724_v8 = vsel %vm308_vm0, %v1449_v6, 0.0  ;;  %v1451_v11 = vpop.eup %1450 }
 0x285   : > { %725 = vadd.xlane.f32.xlu1 %v724_v8  ;;  %v1453_v12 = vpop.eup %1452  ;;  %v712_v20 = vmul.f32 %v1451_v11, %v708_v18 }
 0x286   : > { %v711_v16 = vmul.f32 %v1453_v12, %v707_v15 }
 0x28a   : > { %v1455_v13 = vpop.eup %1454 }
 0x28b   : > { %v1457_v14 = vpop.eup %1456  ;;  %v713_v24 = vmul.f32 %v1455_v13, %v709_v22 }
 0x28c   : > { %v714_v29 = vmul.f32 %v1457_v14, %v710_v26 }
 0x293   : > { %747 = vperm.xlu0 %1440, %v1451_v11  }
 0x296   : > { %742 = vperm.xlu1 %1441, %v1453_v12  }
 0x29a   : > { %752 = vperm.xlu1 %1441, %v1455_v13  }
 0x29e   : > { %757 = vperm.xlu1 %1441, %v1457_v14  }
 0x306   : > { %v717_v17 = vpop.xlane.xlu1 %716 }
 0x307   : > { %v727_v19 = vadd.f32 %v717_v17, %v711_v16 }
 0x309   : > { %732 = vst.msk [vmem:[#allocation4] sm:$0xff] %vm313_vm2, %v727_v19 }
 0x30a   : > { %v720_v21 = vpop.xlane.xlu0 %719 }
 0x30b   : > { %v728_v23 = vadd.f32 %v720_v21, %v712_v20 }
 0x30d   : > { %733 = vst.msk [vmem:[#allocation4 + $0x8] sm:$0xff] %vm313_vm2, %v728_v23 }
 0x30e   : > { %v723_v25 = vpop.xlane.xlu1 %722 }
 0x30f   : > { %v729_v27 = vadd.f32 %v723_v25, %v713_v24 }
 0x310   : > { %v1071_v28 = vld [vmem:[#allocation4] sm:$0xff] }
 0x311   : > { %734 = vst.msk [vmem:[#allocation4 + $0x10] sm:$0xff] %vm313_vm2, %v729_v27  ;;  %1458 = vrcp.f32 %v1071_v28 }
 0x312   : > { %v726_v30 = vpop.xlane.xlu1 %725  ;;  %v748_v43 = vpop.permute.xlu0 %747 }
 0x313   : > { %v730_v31 = vadd.f32 %v726_v30, %v714_v29  ;;  %v761_v48 = vmul.f32 %v748_v43, %v737_v42 }
 0x314   : > { %v1072_v32 = vld [vmem:[#allocation4 + $0x8] sm:$0xff] }
 0x315   : > { %735 = vst.msk [vmem:[#allocation4 + $0x18] sm:$0xff] %vm313_vm2, %v730_v31  ;;  %1460 = vrcp.f32 %v1072_v32 }
 0x316   : > { %v743_v40 = vpop.permute.xlu1 %742 }
 0x317   : > { %v760_v41 = vmul.f32 %v743_v40, %v736_v39 }
 0x318   : > { %v1073_v33 = vld [vmem:[#allocation4 + $0x10] sm:$0xff] }
 0x319   : > { %1462 = vrcp.f32 %v1073_v33 }
 0x31a   : > { %v753_v47 = vpop.permute.xlu1 %752 }
 0x31b   : > { %v1459_v34 = vpop.eup %1458  ;;  %v762_v53 = vmul.f32 %v753_v47, %v738_v49 }
 0x31c   : > { %1089 = vperm.xlu1 %1441, %v1459_v34   ;;  %v1074_v35 = vld [vmem:[#allocation4 + $0x18] sm:$0xff] }
 0x31d   : > { %1464 = vrcp.f32 %v1074_v35 }
 0x31e   : > { %v758_v55 = vpop.permute.xlu1 %757 }
 0x31f   : > { %v1461_v36 = vpop.eup %1460  ;;  %v763_v59 = vmul.f32 %v758_v55, %v739_v54 }
 0x320   : > { %1094 = vperm.xlu0 %1440, %v1461_v36  }
 0x323   : > { %v1463_v37 = vpop.eup %1462 }
 0x324   : > { %1099 = vperm.xlu1 %1441, %v1463_v37  }
 0x327   : > { %v1465_v38 = vpop.eup %1464 }
 0x328   : > { %1104 = vperm.xlu0 %1440, %v1465_v38  }
 0x34b   : > { %v833_v44 = vpop.f32.mrb[4].mxu0 }
 0x34c   : > { %v1056_v45 = vadd.f32 %v833_v44, %v760_v41  ;;  %v1344_v46 = vpop.f32.mrb[5].mxu0 }
 0x34e   : > { %1060 = vst.msk [vmem:[#allocation5] sm:$0xff] %vm308_vm0, %v1056_v45 }
 0x34f   : > { %v906_v50 = vpop.f32.mrb[4].mxu1 }
 0x350   : > { %v1057_v51 = vadd.f32 %v906_v50, %v761_v48  ;;  %v1349_v52 = vpop.f32.mrb[5].mxu1 }
 0x352   : > { %1061 = vst.msk [vmem:[#allocation5 + $0x8] sm:$0xff] %vm308_vm0, %v1057_v51 }
 0x353   : > { %v979_v56 = vpop.f32.mrb[6].mxu0 }
 0x354   : > { %v1058_v57 = vadd.f32 %v979_v56, %v762_v53  ;;  %v1354_v58 = vpop.f32.mrb[7].mxu0 }
 0x355   : > { %v1083_v1 = vld [vmem:[#allocation5] sm:$0xff] }
 0x356   : > { %1062 = vst.msk [vmem:[#allocation5 + $0x10] sm:$0xff] %vm308_vm0, %v1058_v57 }
 0x357   : > { %v1052_v60 = vpop.f32.mrb[6].mxu1 }
 0x358   : > { %v1059_v61 = vadd.f32 %v1052_v60, %v763_v59  ;;  %v1359_v62 = vpop.f32.mrb[7].mxu1 }
 0x359   : > { %v1084_v3 = vld [vmem:[#allocation5 + $0x8] sm:$0xff] }
 0x35a   : > { %1063 = vst.msk [vmem:[#allocation5 + $0x18] sm:$0xff] %vm308_vm0, %v1059_v61 }
 0x35d   : > { %v1085_v7 = vld [vmem:[#allocation5 + $0x10] sm:$0xff] }
 0x361   : > { %v1086_v0 = vld [vmem:[#allocation5 + $0x18] sm:$0xff] }
 0x39b   : > { %v1090_v63 = vpop.permute.xlu1 %1089 }
 0x39c   : > { %v1107_v2 = vmul.f32 %v1090_v63, %v1083_v1 }
 0x39e   : > { %1111 = vst.msk [vmem:[%s295_s24] sm:$0xff] %vm308_vm0, %v1107_v2 }
 0x39f   : > { %v1095_v4 = vpop.permute.xlu0 %1094 }
 0x3a0   : > { %v1108_v5 = vmul.f32 %v1095_v4, %v1084_v3 }
 0x3a2   : > { %1112 = vst.msk [vmem:[%s295_s24 + $0x8] sm:$0xff] %vm308_vm0, %v1108_v5 }
 0x3a3   : > { %v1100_v6 = vpop.permute.xlu1 %1099 }
 0x3a4   : > { %v1109_v8 = vmul.f32 %v1100_v6, %v1085_v7 }
 0x3a6   : > { %1113 = vst.msk [vmem:[%s295_s24 + $0x10] sm:$0xff] %vm308_vm0, %v1109_v8 }
 0x3a7   : > { %v1105_v9 = vpop.permute.xlu0 %1104 }
 0x3a8   : > { %v1110_v10 = vmul.f32 %v1105_v9, %v1086_v0 }
 0x3aa   : > { %1114 = vst.msk [vmem:[%s295_s24 + $0x18] sm:$0xff] %vm308_vm0, %v1110_v10 }
 0x3ab   : > { %1569 = shalt.err (!%p1566_p13)
}
 0x3ac   : > { %s1570_s28 = scalar_lea.hbm %s2030_s30, 512  ;;  %s1574_s10 = scalar_lea.hbm %s2083_s3, 1024 }
 0x3ad   : > { %p1571_p11 = scmp.ne.s32.totalorder %s2030_s30, %s1570_s28  ;;  %p1575_p7 = scmp.lt.u32.totalorder %s2030_s30, %s2083_s3 }
 0x3ae   : > { %p1576_p4 = scmp.lt.u32.totalorder %s1574_s10, %s1570_s28  ;;  %p1578_p0 = scmp.lt.u32.totalorder %s1570_s28, %s2030_s30 }
 0x3af   : > { %p1572_p2 = pnand %p1571_p11, %p2112_p10 }
 0x3b0   : > { %p1577_p3 = por %p1576_p4, %p1575_p7 }
 0x3b1   : > { %p1573_p5 = pneg %p1572_p2 }
 0x3b2   : > { %p1579_p8 = por %p1578_p0, %p1577_p3 }
 0x3b4   : > { %p1580_p9 = pnand %p1579_p8, %p1573_p5 }
 0x3b6   : > { %1583 = shalt.err (!%p1580_p9)
}
 0x3b7   : > { %s1654_s11 = smov 128   ;;  %s1655_s19 = smov 8  }
 0x3b8   : > { %1366 = dma.vmem_to_hbm [thread:$0]  (%p2112_p10), %s2024_s16, 512, %s2030_s30, %s1116_s6, %s1654_s11, %s1654_s11, %s1655_s19  }
 0x3b9 PF: > { %s1145_s9 = sand.u32 1, %s1622_s12   ;;  %p2113_p12 = scmp.ne.s32.totalorder %s2100_s27, 0 }
 0x3ba   : > { %p2114_p1 = scmp.ge.s32.totalorder %s1642_s17, 2  ;;  %s1146_s18 = scalar_lea.sflag [#allocation8], %s1145_s9 }
 0x3bc   : > { %p1379_p6 = pnand %p2114_p1, %p2113_p12 }
 0x3be   : > { %1617 = dma.done.wait (!%p1379_p6), %s1146_s18, 512  }
 0x3bf   : > { %1619 = vsyncadd (!%p1379_p6), %s1146_s18, 4294966784  ;;  %s22_s17 = sadd.s32 1, %s1642_s17   ;;  %s2115_s24 = sld [smem:[#allocation18_spill]] }
 0x3c0   : > { %p19_p13 = scmp.ge.s32.totalorder %s22_s17, 4   ;;  %s2116_s15 = sld [smem:[#allocation16_spill]] }
 0x3c1   : > { %s2117_s16 = sld [smem:[#allocation17_spill]]  ;;  %s2118_s12 = smov %s1626_s13 }
 0x3c2   : > { %s2119_s13 = smov %s1630_s14  ;;  %21 = sbr.rel (!%p19_p13) target bundleno = 10 (0xa), region = 109 }
 0x3c5   : > { %s2120_s14 = smov %s2115_s24 }
 0x3c9   :  { %1151 = vsyncpa [#allocation7], 1 }
 0x3ca   :  { %1153 = vsyncpa [#allocation7 + $0x1], 1 }
 0x3cb   :  { %1154 = vsyncpa [#allocation10], 1 }
 0x3cc   :  { %1156 = vsyncpa [#allocation10 + $0x1], 1 }
 0x3cd   :  { %1157 = vsyncpa [#allocation8], 1 }
 0x3ce   :  { %1159 = vsyncpa [#allocation8 + $0x1], 1 }

</bundles_post_ra>
